<compile_context>
chip_gen: v5e
topology: v5e:2x2
jax: 0.10.0
libtpu: 0.0.40
codegen_flags: <defaults>
</compile_context>

<pallas_src>
import functools

import jax
import jax.numpy as jnp
from jax.experimental import pallas as pl
from jax.experimental.pallas import tpu as pltpu


def _round_up(n, m):
    return ((n + m - 1) // m) * m


def _cdiv(a, b):
    return (a + b - 1) // b


def _nbytes(a):
    return a.size * a.dtype.itemsize


# ---------------------------------------------------------------------------
# Kernel
# ---------------------------------------------------------------------------
def _actor_kernel(x_ref, w1_ref, b1_ref, w2_ref, b2_ref, wh_ref, bh_ref,
                  mask_ref, out_ref, *, compute_dtype):
    x = x_ref[...].astype(compute_dtype)

    # fc1 + ReLU   (f32 MXU accumulate, f32 bias add)
    h1 = jnp.dot(x, w1_ref[...], preferred_element_type=jnp.float32) + b1_ref[...]
    h1 = jnp.maximum(h1, 0.0)

    # fc2 + ReLU
    h2 = jnp.dot(h1.astype(compute_dtype), w2_ref[...],
                 preferred_element_type=jnp.float32) + b2_ref[...]
    h2 = jnp.maximum(h2, 0.0)

    # Fused heads: one matmul against [wm | ws | 0-pad] (lane-dense width P).
    z = jnp.dot(h2.astype(compute_dtype), wh_ref[...],
                preferred_element_type=jnp.float32) + bh_ref[...]

    mean_act = jnp.tanh(z) * 2.0
    # single-evaluation, overflow-free stable softplus (one exp + one log1p)
    std_act = jnp.maximum(z, 0.0) + jnp.log1p(jnp.exp(-jnp.abs(z))) + 0.001

    # Resident 0/1 column mask: cols [0:A] -> mean activation, rest -> std
    # activation (padding lanes hold garbage; the wrapper never reads them).
    m = mask_ref[...]
    out_ref[...] = std_act + m * (mean_act - std_act)


# ---------------------------------------------------------------------------
# One-time parameter preparation (hoisted out of the per-step forward)
# ---------------------------------------------------------------------------
def prepare_actor_params(params, *, compute_dtype=jnp.float32):
    """Call ONCE per parameter set (not per step).

    Pads hidden to a multiple of 128 (lane-dense intermediates, exact zeros so
    results are unchanged), fuses the two heads into one lane-padded weight
    [wm | ws | 0], builds the mean/std column mask, and casts matmul operands
    to `compute_dtype` (bf16 recommended on v6e/v7x for large hidden; biases
    always stay f32 and are added after the f32 MXU accumulate).
    """
    state_dim, hidden = params["w1"].shape
    A = params["wm"].shape[1]
    Hp = _round_up(hidden, 128)
    P = _round_up(2 * A, 128)

    w1 = jnp.zeros((state_dim, Hp), jnp.float32).at[:, :hidden].set(params["w1"])
    b1 = jnp.zeros((1, Hp), jnp.float32).at[:, :hidden].set(params["b1"])
    w2 = jnp.zeros((Hp, Hp), jnp.float32).at[:hidden, :hidden].set(params["w2"])
    b2 = jnp.zeros((1, Hp), jnp.float32).at[:, :hidden].set(params["b2"])
    wh = jnp.zeros((Hp, P), jnp.float32)
    wh = wh.at[:hidden, :A].set(params["wm"]).at[:hidden, A:2 * A].set(params["ws"])
    bh = jnp.zeros((1, P), jnp.float32)
    bh = bh.at[:, :A].set(params["bm"]).at[:, A:2 * A].set(params["bs"])
    mask = (jnp.arange(P, dtype=jnp.int32) < A).astype(jnp.float32).reshape(1, P)

    return dict(
        w1=w1.astype(compute_dtype), b1=b1,
        w2=w2.astype(compute_dtype), b2=b2,
        wh=wh.astype(compute_dtype), bh=bh,
        mask=mask,
        action_dim=A,
        compute_dtype=jnp.dtype(compute_dtype),
    )


# ---------------------------------------------------------------------------
# Forward wrapper (per-step work == one pallas_call)
# ---------------------------------------------------------------------------
# TODO(synk): select_action's Normal sampling + clamp stays in plain JAX
# (mean + std * jax.random.normal, clipped to [-2, 2]); it is not fused here.
def actor_forward(state, prepared, *, block_b=None, return_packed=False):
    """state: (B, state_dim) f32. prepared: output of prepare_actor_params."""
    B, state_dim = state.shape
    w1, b1 = prepared["w1"], prepared["b1"]
    w2, b2 = prepared["w2"], prepared["b2"]
    wh, bh = prepared["wh"], prepared["bh"]
    mask = prepared["mask"]
    A = prepared["action_dim"]
    compute_dtype = prepared["compute_dtype"]
    Hp = w1.shape[1]
    P = wh.shape[1]

    # Batch tile: large enough to amortize ~0.35us/step grid overhead, padding
    # never exceeding one tile, and >= 2 steps (when B > 8) so ("parallel",)
    # can shard across v7x's two TensorCores.
    if block_b is None:
        n_tiles = _cdiv(B, 512)
        if B > 8:
            n_tiles = max(n_tiles, 2)
        block_b = _round_up(_cdiv(B, n_tiles), 8)
    Bp = _round_up(B, block_b)
    if Bp != B:
        state = jnp.pad(state, ((0, Bp - B), (0, 0)))
    grid = (Bp // block_b,)

    weights = (w1, b1, w2, b2, wh, bh, mask)
    weight_bytes = sum(_nbytes(a) for a in weights)
    # Single-buffer the VMEM-resident weights only when their footprint is big
    # enough to matter (v7x has only 64 MiB physical VMEM); tiny weights keep
    # the default pipelining path.
    single_buffer = weight_bytes > (4 << 20)

    def resident(a):  # constant index_map -> block stays VMEM-resident
        if single_buffer:
            return pl.BlockSpec(a.shape, lambda i: (0,) * a.ndim,
                                pipeline_mode=pl.Buffered(1))
        return pl.BlockSpec(a.shape, lambda i: (0,) * a.ndim)

    # Scoped-VMEM budget: resident weights + double-buffered x/out tiles +
    # f32 intermediates, with 2x headroom (v5e's default scoped limit is only
    # 16 MiB even though physical VMEM is 128 MiB).
    io_bytes = 2 * block_b * (state_dim * state.dtype.itemsize + P * 4)
    interm_bytes = 4 * block_b * (2 * Hp + 4 * P)
    est = (1 if single_buffer else 2) * weight_bytes + io_bytes + interm_bytes
    vmem_limit = int(min(max(2 * est, 32 << 20), 64 << 20))

    kernel = functools.partial(_actor_kernel, compute_dtype=compute_dtype)

    out = pl.pallas_call(
        kernel,
        out_shape=jax.ShapeDtypeStruct((Bp, P), jnp.float32),
        grid=grid,
        in_specs=[
            pl.BlockSpec((block_b, state_dim), lambda i: (i, 0)),
            resident(w1), resident(b1),
            resident(w2), resident(b2),
            resident(wh), resident(bh),
            resident(mask),
        ],
        out_specs=pl.BlockSpec((block_b, P), lambda i: (i, 0)),
        compiler_params=pltpu.CompilerParams(
            dimension_semantics=("parallel",),
            vmem_limit_bytes=vmem_limit),
    )(state, w1, b1, w2, b2, wh, bh, mask)

    if return_packed:
        # (Bp, P) slab: cols [0:A]=mean, [A:2A]=std, remaining cols / pad rows
        # are garbage -- lets downstream consumers skip the re-read slices.
        return out
    return out[:B, :A], out[:B, A:2 * A]


def init_params(key, state_dim, action_dim, hidden_dim):
    """Deterministic synthetic init (PyTorch-like uniform fan-in scaling)."""
    ks = jax.random.split(key, 8)

    def lin(kw, kb, fan_in, fan_out):
        bound = 1.0 / jnp.sqrt(float(fan_in))
        w = jax.random.uniform(kw, (fan_in, fan_out), jnp.float32, -bound, bound)
        b = jax.random.uniform(kb, (1, fan_out), jnp.float32, -bound, bound)
        return w, b

    w1, b1 = lin(ks[0], ks[1], state_dim, hidden_dim)
    w2, b2 = lin(ks[2], ks[3], hidden_dim, hidden_dim)
    wm, bm = lin(ks[4], ks[5], hidden_dim, action_dim)
    ws, bs = lin(ks[6], ks[7], hidden_dim, action_dim)
    return dict(w1=w1, b1=b1, w2=w2, b2=b2, wm=wm, bm=bm, ws=ws, bs=bs)


if __name__ == "__main__":
    key = jax.random.PRNGKey(0)
    batch, state_dim, action_dim, hidden_dim = 8, 8, 4, 32

    k_params, k_state = jax.random.split(key)
    params = init_params(k_params, state_dim, action_dim, hidden_dim)
    state = jax.random.normal(k_state, (batch, state_dim), jnp.float32)

    prepared = prepare_actor_params(params)               # hoisted: once per param set
    fwd = jax.jit(lambda s: actor_forward(s, prepared))   # per-step work = Pallas call

    mean, std = fwd(state)
    jax.block_until_ready((mean, std))

    # pure-JAX reference (matches the PyTorch forward)
    def ref(x, p):
        h1 = jnp.maximum(x @ p["w1"] + p["b1"], 0.0)
        h2 = jnp.maximum(h1 @ p["w2"] + p["b2"], 0.0)
        m = jnp.tanh(h2 @ p["wm"] + p["bm"]) * 2.0
        s = jax.nn.softplus(h2 @ p["ws"] + p["bs"]) + 0.001
        return m, s

    m_ref, s_ref = ref(state, params)
    assert mean.shape == (batch, action_dim) and std.shape == (batch, action_dim)
    assert jnp.allclose(mean, m_ref, atol=1e-5), "mean mismatch"
    assert jnp.allclose(std, s_ref, atol=1e-5), "std mismatch"

    print("KERNEL_OK")
</pallas_src>

<mosaic_0001>
module attributes {stable_mosaic.version = 11 : i64} {
  func.func @_actor_kernel(%arg0: i32, %arg1: memref<8x8xf32, #tpu.memory_space<vmem>>, %arg2: memref<8x128xf32, #tpu.memory_space<vmem>>, %arg3: memref<1x128xf32, #tpu.memory_space<vmem>>, %arg4: memref<128x128xf32, #tpu.memory_space<vmem>>, %arg5: memref<1x128xf32, #tpu.memory_space<vmem>>, %arg6: memref<128x128xf32, #tpu.memory_space<vmem>>, %arg7: memref<1x128xf32, #tpu.memory_space<vmem>>, %arg8: memref<1x128xf32, #tpu.memory_space<vmem>>, %arg9: memref<8x128xf32, #tpu.memory_space<vmem>>) attributes {dimension_semantics = [#tpu.dimension_semantics<parallel>], iteration_bounds = array<i64: 1>, scalar_prefetch = 0 : i64, scratch_operands = 0 : i64, tpu.core_type = #tpu.core_type<tc>, window_params = [{transform_indices = @transform_0, window_bounds = array<i64: 8, 8>}, {pipeline_mode = #tpu.pipeline_mode<synchronous>, transform_indices = @transform_1, window_bounds = array<i64: 8, 128>}, {pipeline_mode = #tpu.pipeline_mode<synchronous>, transform_indices = @transform_2, window_bounds = array<i64: 1, 128>}, {pipeline_mode = #tpu.pipeline_mode<synchronous>, transform_indices = @transform_3, window_bounds = array<i64: 128, 128>}, {pipeline_mode = #tpu.pipeline_mode<synchronous>, transform_indices = @transform_4, window_bounds = array<i64: 1, 128>}, {pipeline_mode = #tpu.pipeline_mode<synchronous>, transform_indices = @transform_5, window_bounds = array<i64: 128, 128>}, {pipeline_mode = #tpu.pipeline_mode<synchronous>, transform_indices = @transform_6, window_bounds = array<i64: 1, 128>}, {pipeline_mode = #tpu.pipeline_mode<synchronous>, transform_indices = @transform_7, window_bounds = array<i64: 1, 128>}, {transform_indices = @transform_8, window_bounds = array<i64: 8, 128>}]} {
    %c0 = arith.constant 0 : index
    %c0_0 = arith.constant 0 : index
    %0 = vector.load %arg1[%c0, %c0_0] : memref<8x8xf32, #tpu.memory_space<vmem>>, vector<8x8xf32>
    %c0_1 = arith.constant 0 : index
    %c0_2 = arith.constant 0 : index
    %1 = vector.load %arg2[%c0_1, %c0_2] : memref<8x128xf32, #tpu.memory_space<vmem>>, vector<8x128xf32>
    %cst = arith.constant dense<0.000000e+00> : vector<8x128xf32>
    %2 = tpu.matmul %0, %1, %cst {dimension_numbers = #tpu.dot_dimension_numbers<[1], [0], [0], [1], [0, 0, 1, 1], [], []>} : vector<8x8xf32>, vector<8x128xf32>, vector<8x128xf32> -> vector<8x128xf32>
    %c0_3 = arith.constant 0 : index
    %c0_4 = arith.constant 0 : index
    %3 = vector.load %arg3[%c0_3, %c0_4] : memref<1x128xf32, #tpu.memory_space<vmem>>, vector<1x128xf32>
    %4 = vector.broadcast %3 : vector<1x128xf32> to vector<8x128xf32>
    %5 = arith.addf %2, %4 : vector<8x128xf32>
    %cst_5 = arith.constant 0.000000e+00 : f32
    %6 = vector.broadcast %cst_5 : f32 to vector<8x128xf32>
    %7 = arith.maximumf %5, %6 : vector<8x128xf32>
    %c0_6 = arith.constant 0 : index
    %c0_7 = arith.constant 0 : index
    %8 = vector.load %arg4[%c0_6, %c0_7] : memref<128x128xf32, #tpu.memory_space<vmem>>, vector<128x128xf32>
    %cst_8 = arith.constant dense<0.000000e+00> : vector<8x128xf32>
    %9 = tpu.matmul %7, %8, %cst_8 {dimension_numbers = #tpu.dot_dimension_numbers<[1], [0], [0], [1], [0, 0, 1, 1], [], []>} : vector<8x128xf32>, vector<128x128xf32>, vector<8x128xf32> -> vector<8x128xf32>
    %c0_9 = arith.constant 0 : index
    %c0_10 = arith.constant 0 : index
    %10 = vector.load %arg5[%c0_9, %c0_10] : memref<1x128xf32, #tpu.memory_space<vmem>>, vector<1x128xf32>
    %11 = vector.broadcast %10 : vector<1x128xf32> to vector<8x128xf32>
    %12 = arith.addf %9, %11 : vector<8x128xf32>
    %cst_11 = arith.constant 0.000000e+00 : f32
    %13 = vector.broadcast %cst_11 : f32 to vector<8x128xf32>
    %14 = arith.maximumf %12, %13 : vector<8x128xf32>
    %c0_12 = arith.constant 0 : index
    %c0_13 = arith.constant 0 : index
    %15 = vector.load %arg6[%c0_12, %c0_13] : memref<128x128xf32, #tpu.memory_space<vmem>>, vector<128x128xf32>
    %cst_14 = arith.constant dense<0.000000e+00> : vector<8x128xf32>
    %16 = tpu.matmul %14, %15, %cst_14 {dimension_numbers = #tpu.dot_dimension_numbers<[1], [0], [0], [1], [0, 0, 1, 1], [], []>} : vector<8x128xf32>, vector<128x128xf32>, vector<8x128xf32> -> vector<8x128xf32>
    %c0_15 = arith.constant 0 : index
    %c0_16 = arith.constant 0 : index
    %17 = vector.load %arg7[%c0_15, %c0_16] : memref<1x128xf32, #tpu.memory_space<vmem>>, vector<1x128xf32>
    %18 = vector.broadcast %17 : vector<1x128xf32> to vector<8x128xf32>
    %19 = arith.addf %16, %18 : vector<8x128xf32>
    %20 = math.tanh %19 : vector<8x128xf32>
    %cst_17 = arith.constant 2.000000e+00 : f32
    %21 = vector.broadcast %cst_17 : f32 to vector<8x128xf32>
    %22 = arith.mulf %20, %21 : vector<8x128xf32>
    %cst_18 = arith.constant 0.000000e+00 : f32
    %23 = vector.broadcast %cst_18 : f32 to vector<8x128xf32>
    %24 = arith.maximumf %19, %23 : vector<8x128xf32>
    %25 = math.absf %19 : vector<8x128xf32>
    %cst_19 = arith.constant 0.000000e+00 : f32
    %26 = vector.broadcast %cst_19 : f32 to vector<8x128xf32>
    %27 = arith.subf %26, %25 : vector<8x128xf32>
    %28 = math.exp %27 : vector<8x128xf32>
    %29 = math.log1p %28 : vector<8x128xf32>
    %30 = arith.addf %24, %29 : vector<8x128xf32>
    %cst_20 = arith.constant 1.000000e-03 : f32
    %31 = vector.broadcast %cst_20 : f32 to vector<8x128xf32>
    %32 = arith.addf %30, %31 : vector<8x128xf32>
    %c0_21 = arith.constant 0 : index
    %c0_22 = arith.constant 0 : index
    %33 = vector.load %arg8[%c0_21, %c0_22] : memref<1x128xf32, #tpu.memory_space<vmem>>, vector<1x128xf32>
    %34 = arith.subf %22, %32 : vector<8x128xf32>
    %35 = vector.broadcast %33 : vector<1x128xf32> to vector<8x128xf32>
    %36 = arith.mulf %35, %34 : vector<8x128xf32>
    %37 = arith.addf %32, %36 : vector<8x128xf32>
    %c0_23 = arith.constant 0 : index
    %c0_24 = arith.constant 0 : index
    %38 = vector.load %arg9[%c0_23, %c0_24] : memref<8x128xf32, #tpu.memory_space<vmem>>, vector<8x128xf32>
    tpu.vector_store %arg9[%c0_23, %c0_24], %37 {strides = array<i32>} : memref<8x128xf32, #tpu.memory_space<vmem>>, vector<8x128xf32>,
    return
  }
  func.func @transform_0(%arg0: i32) -> (i32, i32) {
    %c0_i32 = arith.constant 0 : i32
    %c0_i32_0 = arith.constant 0 : i32
    return %arg0, %c0_i32 : i32, i32
  }
  func.func @transform_1(%arg0: i32) -> (i32, i32) {
    %c0_i32 = arith.constant 0 : i32
    %c0_i32_0 = arith.constant 0 : i32
    %c0_i32_1 = arith.constant 0 : i32
    return %c0_i32, %c0_i32_0 : i32, i32
  }
  func.func @transform_2(%arg0: i32) -> (i32, i32) {
    %c0_i32 = arith.constant 0 : i32
    %c0_i32_0 = arith.constant 0 : i32
    %c0_i32_1 = arith.constant 0 : i32
    return %c0_i32, %c0_i32_0 : i32, i32
  }
  func.func @transform_3(%arg0: i32) -> (i32, i32) {
    %c0_i32 = arith.constant 0 : i32
    %c0_i32_0 = arith.constant 0 : i32
    %c0_i32_1 = arith.constant 0 : i32
    return %c0_i32, %c0_i32_0 : i32, i32
  }
  func.func @transform_4(%arg0: i32) -> (i32, i32) {
    %c0_i32 = arith.constant 0 : i32
    %c0_i32_0 = arith.constant 0 : i32
    %c0_i32_1 = arith.constant 0 : i32
    return %c0_i32, %c0_i32_0 : i32, i32
  }
  func.func @transform_5(%arg0: i32) -> (i32, i32) {
    %c0_i32 = arith.constant 0 : i32
    %c0_i32_0 = arith.constant 0 : i32
    %c0_i32_1 = arith.constant 0 : i32
    return %c0_i32, %c0_i32_0 : i32, i32
  }
  func.func @transform_6(%arg0: i32) -> (i32, i32) {
    %c0_i32 = arith.constant 0 : i32
    %c0_i32_0 = arith.constant 0 : i32
    %c0_i32_1 = arith.constant 0 : i32
    return %c0_i32, %c0_i32_0 : i32, i32
  }
  func.func @transform_7(%arg0: i32) -> (i32, i32) {
    %c0_i32 = arith.constant 0 : i32
    %c0_i32_0 = arith.constant 0 : i32
    %c0_i32_1 = arith.constant 0 : i32
    return %c0_i32, %c0_i32_0 : i32, i32
  }
  func.func @transform_8(%arg0: i32) -> (i32, i32) {
    %c0_i32 = arith.constant 0 : i32
    %c0_i32_0 = arith.constant 0 : i32
    return %arg0, %c0_i32 : i32, i32
  }
}

</mosaic_0001>

<bundles_post_ra>
// kernel: _lambda_.1
= control target key start
LH: loop header
LB: loop body
LE: loop exit
PB: predicated region body
PF: predicated region fallthrough
CT: control target
= control target key end

     0   :  { %13 = vsyncpa [#allocation3], 0  ;;  %s469_s0 = inlined_call_operand.hbm [shape: f32[8,8], index: 0, kind: input, shape index: {}]   ;;  %s470_s1 = inlined_call_operand.hbm [shape: f32[8,128], index: 1, kind: input, shape index: {}]   ;;  %s471_s2 = inlined_call_operand.hbm [shape: f32[1,128], index: 2, kind: input, shape index: {}]   ;;  %s472_s3 = inlined_call_operand.hbm [shape: f32[128,128], index: 3, kind: input, shape index: {}]   ;;  %s473_s4 = inlined_call_operand.vmem [shape: f32[1,128], index: 4, kind: input, shape index: {}]   ;;  %s474_s5 = inlined_call_operand.hbm [shape: f32[128,128], index: 5, kind: input, shape index: {}]   ;;  %s475_s6 = inlined_call_operand.vmem [shape: f32[1,128], index: 6, kind: input, shape index: {}]   ;;  %s476_s7 = inlined_call_operand.vmem [shape: f32[1,128], index: 7, kind: input, shape index: {}]   ;;  %s477_s8 = inlined_call_operand.vmem [shape: f32[8,128], index: 8, kind: output, shape index: {}]  }
   0x1   :  { %14 = vsyncpa [#allocation5], 0  ;;  %s32_s29 = sshll.u32 %s470_s1, 4  ;;  %s33_s29 = int_to_ptr.hbm [resolvable:$true] %s32_s29 }
   0x2   :  { %15 = vsyncpa [#allocation8], 0  ;;  %s390_s30 = smov [#allocation4]   ;;  %s53_s12 = sshll.u32 %s472_s3, 4  ;;  %s54_s12 = int_to_ptr.hbm [resolvable:$true] %s53_s12 }
   0x3   :  { %s34_s9 = sshll.u32 %s390_s30, 4  ;;  %s391_s13 = smov [#allocation7]   ;;  %s35_s9 = int_to_ptr.vmem [resolvable:$true] %s34_s9 }
   0x4   :  { %37 = dma.hbm_to_vmem [thread:$0]  %s33_s29, 128, %s35_s9, [#allocation5]  }
   0x5   :  { %s55_s14 = sshll.u32 %s391_s13, 4  ;;  %s392_s15 = smov 128   ;;  %s56_s14 = int_to_ptr.vmem [resolvable:$true] %s55_s14 }
   0x6   :  { %s393_s16 = smov 8   ;;  %s21_s1 = sshll.u32 %s469_s0, 4  ;;  %s22_s1 = int_to_ptr.hbm [resolvable:$true] %s21_s1 }
   0x7   :  { %61 = dma.hbm_to_vmem [thread:$0]  %s54_s12, 2048, %s56_s14, [#allocation8], %s392_s15, %s392_s15, %s393_s16  }
   0x8   :  { %s394_s19 = smov [#allocation2]   ;;  %s43_s3 = sshll.u32 %s471_s2, 4  ;;  %s44_s3 = int_to_ptr.hbm [resolvable:$true] %s43_s3 }
   0x9   :  { %s23_s20 = sshll.u32 %s394_s19, 4  ;;  %s395_s23 = smov [#allocation6]   ;;  %s24_s20 = int_to_ptr.vmem [resolvable:$true] %s23_s20 }
   0xa   :  { %26 = dma.hbm_to_vmem [thread:$0]  %s22_s1, 128, %s24_s20, [#allocation3]  }
   0xb   :  { %s45_s24 = sshll.u32 %s395_s23, 4  ;;  %s68_s27 = sshll.u32 %s474_s5, 4  ;;  %s46_s24 = int_to_ptr.vmem [resolvable:$true] %s45_s24  ;;  %s69_s27 = int_to_ptr.hbm [resolvable:$true] %s68_s27 }
   0xc   :  { %48 = dma.hbm_to_vmem [thread:$0]  %s44_s3, 16, %s46_s24, [#allocation5]  }
   0xd   :  { %s396_s0 = smov [#allocation9]  }
   0xe   :  { %s70_s28 = sshll.u32 %s396_s0, 4  ;;  %s71_s28 = int_to_ptr.vmem [resolvable:$true] %s70_s28 }
   0xf   :  { %76 = dma.hbm_to_vmem [thread:$0]  %s69_s27, 2048, %s71_s28, [#allocation8], %s392_s15, %s392_s15, %s393_s16  }
  0x10   :  { %384 = dma.done.wait [#allocation3], 128  }
  0x11   :  { %385 = vsyncadd [#allocation3], 4294967168 }
  0x12   :  { %386 = dma.done.wait [#allocation5], 144  }
  0x13   :  { %387 = vsyncadd [#allocation5], 4294967152 }
  0x14   :  { %388 = dma.done.wait [#allocation8], 4096  }
  0x15   :  { %389 = vsyncadd [#allocation8], 4294963200  ;;  %vm107_vm0 = vcmask 64512   ;;  %v102_v0 = vld [vmem:[#allocation4] sm:$0xff]  ;;  %v101_v1 = vld [vmem:[#allocation2] sm:$0xff] }
  0x16   :  { %v147_v2 = vld [vmem:[#allocation7 + $0x78] sm:$0xff]  ;;  %126 = vmatpush.msra.mxu0 %v102_v0  ;;  %v146_v3 = vld [vmem:[#allocation7 + $0x70] sm:$0xff]  ;;  %v145_v4 = vld [vmem:[#allocation7 + $0x68] sm:$0xff] }
  0x17   :  { %152 = vmatpush.msra.mxu1 %v147_v2  ;;  %246 = vmatmul.msk.f32.vlgmr.msra.gmra.mxu0 %vm107_vm0, %v101_v1  ;;  %v144_v5 = vld [vmem:[#allocation7 + $0x60] sm:$0xff]  ;;  %v143_v6 = vld [vmem:[#allocation7 + $0x58] sm:$0xff]  ;;  %v142_v7 = vld [vmem:[#allocation7 + $0x50] sm:$0xff] }
  0x18   :  { %v141_v8 = vld [vmem:[#allocation7 + $0x48] sm:$0xff]  ;;  %v140_v9 = vld [vmem:[#allocation7 + $0x40] sm:$0xff]  ;;  %v139_v10 = vld [vmem:[#allocation7 + $0x38] sm:$0xff] }
  0x19   :  { %153 = vmatpush.msra.mxu1 %v146_v3  ;;  %v138_v11 = vld [vmem:[#allocation7 + $0x30] sm:$0xff]  ;;  %v137_v12 = vld [vmem:[#allocation7 + $0x28] sm:$0xff]  ;;  %v136_v13 = vld [vmem:[#allocation7 + $0x20] sm:$0xff] }
  0x1a   :  { %v135_v14 = vld [vmem:[#allocation7 + $0x18] sm:$0xff]  ;;  %v134_v15 = vld [vmem:[#allocation7 + $0x10] sm:$0xff]  ;;  %v133_v16 = vld [vmem:[#allocation7 + $0x8] sm:$0xff] }
  0x1b   :  { %154 = vmatpush.msra.mxu1 %v145_v4  ;;  %v132_v17 = vld [vmem:[#allocation7] sm:$0xff]  ;;  %v188_v18 = vld [vmem:[#allocation9 + $0x78] sm:$0xff]  ;;  %v187_v19 = vld [vmem:[#allocation9 + $0x70] sm:$0xff] }
  0x1c   :  { %193 = vmatpush.msra.mxu2 %v188_v18  ;;  %v186_v20 = vld [vmem:[#allocation9 + $0x68] sm:$0xff]  ;;  %v185_v21 = vld [vmem:[#allocation9 + $0x60] sm:$0xff]  ;;  %v184_v22 = vld [vmem:[#allocation9 + $0x58] sm:$0xff] }
  0x1d   :  { %155 = vmatpush.msra.mxu1 %v144_v5  ;;  %v183_v23 = vld [vmem:[#allocation9 + $0x50] sm:$0xff]  ;;  %v182_v24 = vld [vmem:[#allocation9 + $0x48] sm:$0xff]  ;;  %v181_v25 = vld [vmem:[#allocation9 + $0x40] sm:$0xff] }
  0x1e   :  { %194 = vmatpush.msra.mxu2 %v187_v19  ;;  %v180_v26 = vld [vmem:[#allocation9 + $0x38] sm:$0xff]  ;;  %v179_v27 = vld [vmem:[#allocation9 + $0x30] sm:$0xff]  ;;  %v178_v28 = vld [vmem:[#allocation9 + $0x28] sm:$0xff] }
  0x1f   :  { %156 = vmatpush.msra.mxu1 %v143_v6  ;;  %v177_v29 = vld [vmem:[#allocation9 + $0x20] sm:$0xff]  ;;  %v176_v30 = vld [vmem:[#allocation9 + $0x18] sm:$0xff]  ;;  %v175_v35 = vld [vmem:[#allocation9 + $0x10] sm:$0xff] }
  0x20   :  { %195 = vmatpush.msra.mxu2 %v186_v20  ;;  %v254_v31 = vld [vmem:[#allocation6] ss:$0 sm:$0xff]  ;;  %v174_v36 = vld [vmem:[#allocation9 + $0x8] sm:$0xff]  ;;  %v173_v37 = vld [vmem:[#allocation9] sm:$0xff] }
  0x21   :  { %157 = vmatpush.msra.mxu1 %v142_v7  ;;  %v255_v38 = vld [vmem:[%s473_s4] ss:$0 sm:$0xff] }
  0x22   :  { %196 = vmatpush.msra.mxu2 %v185_v21  ;;  %v256_v42 = vld [vmem:[%s475_s6] ss:$0 sm:$0xff] }
  0x23   :  { %158 = vmatpush.msra.mxu1 %v141_v8  ;;  %v257_v62 = vld [vmem:[%s476_s7] ss:$0 sm:$0xff] }
  0x24   :  { %197 = vmatpush.msra.mxu2 %v184_v22 }
  0x25   :  { %159 = vmatpush.msra.mxu1 %v140_v9 }
  0x26   :  { %198 = vmatpush.msra.mxu2 %v183_v23 }
  0x27   :  { %160 = vmatpush.msra.mxu1 %v139_v10 }
  0x28   :  { %199 = vmatpush.msra.mxu2 %v182_v24 }
  0x29   :  { %161 = vmatpush.msra.mxu1 %v138_v11 }
  0x2a   :  { %200 = vmatpush.msra.mxu2 %v181_v25 }
  0x2b   :  { %162 = vmatpush.msra.mxu1 %v137_v12 }
  0x2c   :  { %201 = vmatpush.msra.mxu2 %v180_v26 }
  0x2d   :  { %163 = vmatpush.msra.mxu1 %v136_v13 }
  0x2e   :  { %202 = vmatpush.msra.mxu2 %v179_v27 }
  0x2f   :  { %164 = vmatpush.msra.mxu1 %v135_v14 }
  0x30   :  { %203 = vmatpush.msra.mxu2 %v178_v28 }
  0x31   :  { %165 = vmatpush.msra.mxu1 %v134_v15 }
  0x32   :  { %204 = vmatpush.msra.mxu2 %v177_v29 }
  0x33   :  { %166 = vmatpush.msra.mxu1 %v133_v16 }
  0x34   :  { %205 = vmatpush.msra.mxu2 %v176_v30 }
  0x35   :  { %167 = vmatpush.msra.mxu1 %v132_v17 }
  0x36   :  { %206 = vmatpush.msra.mxu2 %v175_v35 }
  0x38   :  { %207 = vmatpush.msra.mxu2 %v174_v36 }
  0x3a   :  { %208 = vmatpush.msra.mxu2 %v173_v37 }
  0x94   :  { %v128_v32 = vpop.f32.mrf.mxu0 }
  0x95   :  { %v129_v33 = vadd.f32 %v254_v31, %v128_v32 }
  0x97   :  { %v131_v34 = vmax.f32 %v129_v33, 0.0 }
  0x99   :  { %168 = vmatmul.f32.vlgmr.msra.gmra.mxu1 %v131_v34 }
 0x116   :  { %v169_v39 = vpop.f32.mrf.mxu1 }
 0x117   :  { %v170_v40 = vadd.f32 %v255_v38, %v169_v39 }
 0x119   :  { %v172_v41 = vmax.f32 %v170_v40, 0.0 }
 0x11b   :  { %209 = vmatmul.f32.vlgmr.msra.gmra.mxu2 %v172_v41 }
 0x19e   :  { %v210_v43 = vpop.f32.mrf.mxu2 }
 0x19f   :  { %v211_v44 = vadd.f32 %v256_v42, %v210_v43 }
 0x1a1   :  { %v216_v45 = vand.u32 2147483647, %v211_v44  ;;  %v215_v56 = vmax.f32 %v211_v44, 0.0 }
 0x1a3   :  { %v217_v46 = vsub.f32 0.0, %v216_v45 }
 0x1a5   :  { %v218_v47 = vmul.f32 1.442695, %v217_v46 }
 0x1a7   :  { %258 = vpow2.f32 %v218_v47 }
 0x1ad   :  { %v259_v48 = vpop.eup %258 }
 0x1ae   :  { %v220_v49 = vadd.f32 1.0, %v259_v48  ;;  %v223_v50 = vmul.f32 -0.5, %v259_v48  ;;  %v226_v52 = vand.u32 2147483647, %v259_v48 }
 0x1b0   :  { %260 = vlog2.f32 %v220_v49  ;;  %v224_v51 = vadd.f32 1.0, %v223_v50  ;;  %vm227_vm1 = vcmp.lt.f32.partialorder %v226_v52, 0.0004427343 }
 0x1b1   :  { %262 = vtanh.f32 %v211_v44 }
 0x1b2   :  { %v225_v55 = vmul.f32 %v259_v48, %v224_v51 }
 0x1b6   :  { %v261_v53 = vpop.eup %260 }
 0x1b7   :  { %v222_v54 = vmul.f32 0.6931472, %v261_v53  ;;  %v263_v57 = vpop.eup %262 }
 0x1b8   :  { %v214_v60 = vmul.f32 2.0, %v263_v57 }
 0x1b9   :  { %v228_v58 = vsel %vm227_vm1, %v225_v55, %v222_v54 }
 0x1ba   :  { %v229_v59 = vadd.f32 %v228_v58, %v215_v56 }
 0x1bc   :  { %v230_v61 = vadd.f32 0.001, %v229_v59 }
 0x1be   :  { %v232_v63 = vsub.f32 %v214_v60, %v230_v61 }
 0x1c0   :  { %v236_v0 = vmul.f32 %v257_v62, %v232_v63 }
 0x1c2   :  { %v237_v1 = vadd.f32 %v236_v0, %v230_v61 }
 0x1c4   :  { %238 = vst [vmem:[%s477_s8] sm:$0xff] %v237_v1 }
 0x1c5   :  { %243 = vsyncpa [#allocation3], 1 }
 0x1c6   :  { %244 = vsyncpa [#allocation5], 1 }
 0x1c7   :  { %245 = vsyncpa [#allocation8], 1 }

</bundles_post_ra>
